<compile_context>
chip_gen: v7x
topology: tpu7x:2x2x1
jax: 0.10.0
libtpu: 0.0.40
codegen_flags: <defaults>
</compile_context>

<pallas_src>
import functools

import jax
import jax.numpy as jnp
from jax.experimental import pallas as pl
from jax.experimental.pallas import tpu as pltpu

OUT_DIM = 4
EMBED_DIM = 768
BN_EPS = 1e-5
NORM_EPS = 1e-12  # F.normalize default eps


def _evidence_head_kernel(hidden_ref, scale_ref, shift_ref, w_ref, b_ref,
                          out_ref, acc_ref, *, seq_len):
    # Grid = (batch_tiles, seq_tiles); seq (axis 1) is the reduction axis.
    k = pl.program_id(1)

    @pl.when(k == 0)
    def _init():
        acc_ref[...] = jnp.zeros_like(acc_ref)

    # Fused bf16 -> f32 sequence-sum accumulation: the upcast feeds the reduce
    # directly, so no (TB, TS, D) float32 temporary is materialized in VMEM.
    acc_ref[...] += jnp.sum(hidden_ref[...], axis=1, dtype=jnp.float32)

    @pl.when(k == pl.num_programs(1) - 1)
    def _finalize():
        s = acc_ref[...]                                 # sum over S, [TB, D]
        # mean + L2-normalize: sum/||sum|| == mean/||mean|| ; eps scaled by S
        # so max(||mean||, eps) parity is preserved near zero.
        sq = jnp.sum(s * s, axis=-1, keepdims=True)      # [TB, 1]
        eps = jnp.float32(NORM_EPS * seq_len)
        x = s * jax.lax.rsqrt(jnp.maximum(sq, eps * eps))
        # Folded eval-mode BatchNorm1d: x * scale + shift.
        x = x * scale_ref[...] + shift_ref[...]
        # ReLU. (Dropout(0.5) in eval mode = identity.)
        x = jnp.maximum(x, 0.0)
        # Linear(768, 4).
        y = jnp.dot(x, w_ref[...], preferred_element_type=jnp.float32)
        out_ref[...] = (y + b_ref[...]).astype(out_ref.dtype)


def _vmem_caps():
    """Per-tile byte budget and scoped vmem_limit, tuned per TPU generation."""
    cap = None
    try:
        info = pltpu.get_tpu_info()
        cap = int(getattr(info, "vmem_capacity_bytes", 0)) or None
    except Exception:
        cap = None
    if cap is None:
        cap = 64 * 1024 * 1024                  # conservative: assume v7x per-TC
    if cap >= 128 * 1024 * 1024:                # v5e / v6e: 128 MiB physical VMEM
        return 26 * 1024 * 1024, 64 * 1024 * 1024
    # v7x: 64 MiB per TensorCore -> keep tiles small, cap the scoped limit.
    return 12 * 1024 * 1024, 48 * 1024 * 1024


def _pick_tb(batch_padded):
    # Output block is (TB, 4): TB must be a multiple of 8 or equal B.
    # The wrapper pads B to a multiple of 8 whenever B > 8, which also yields
    # >= 2 batch tiles on the "parallel" axis (keeps both v7x TCs busy).
    if batch_padded > 8 and batch_padded % 8 == 0:
        return 8
    return batch_padded


def _pick_ts(seq, tb, itemsize, budget_bytes, max_ts=None):
    # Keep one hidden tile within the generation-aware budget so the
    # double-buffered input + accumulator + params fit the scoped VMEM limit.
    cap = max(16, budget_bytes // (tb * EMBED_DIM * itemsize))
    if max_ts is not None:
        cap = min(cap, max_ts)
    # bf16 packs 16 rows per vreg on the sublane axis -> TS must be a multiple
    # of 16 (the old TS=8 candidate was dropped).
    for c in (2048, 1024, 512, 256, 128, 64, 32, 16):
        if c <= cap and seq % c == 0:
            return c
    return seq  # small / awkward S: take the whole sequence in one block


def evidence_head(hidden, gamma, beta, running_mean, running_var, w, b,
                  max_ts=None):
    """hidden: [B, S, D] (f32 or bf16); returns logits [B, 4] float32."""
    B, S, D = hidden.shape
    assert D == EMBED_DIM

    # Fold eval-mode BatchNorm into per-feature scale / shift ([1, D] rows).
    g32 = gamma.astype(jnp.float32)
    inv_std = jax.lax.rsqrt(running_var.astype(jnp.float32) + BN_EPS)
    scale = (g32 * inv_std).reshape(1, D)
    shift = (beta.astype(jnp.float32)
             - running_mean.astype(jnp.float32) * g32 * inv_std).reshape(1, D)
    b2 = b.reshape(1, OUT_DIM).astype(jnp.float32)
    w2 = w.astype(jnp.float32)

    # Pad batch to a multiple of 8 when B > 8 (zero rows, sliced off below):
    # keeps the (8, 4) output block legal and guarantees >= 2 "parallel"
    # batch tiles so both v7x TensorCores get work.
    B_pad = B if B <= 8 else ((B + 7) // 8) * 8
    if B_pad != B:
        hidden = jnp.pad(hidden, ((0, B_pad - B), (0, 0), (0, 0)))

    budget_bytes, vmem_limit = _vmem_caps()
    TB = _pick_tb(B_pad)
    TS = _pick_ts(S, TB, hidden.dtype.itemsize, budget_bytes, max_ts=max_ts)
    grid = (B_pad // TB, S // TS)

    kernel = functools.partial(_evidence_head_kernel, seq_len=float(S))

    small_bytes = (2 * D + D * OUT_DIM + OUT_DIM + B_pad * OUT_DIM) * 4
    cost = pl.CostEstimate(
        flops=2 * B_pad * S * D + 2 * B_pad * D * OUT_DIM,
        transcendentals=B_pad,
        bytes_accessed=B_pad * S * D * hidden.dtype.itemsize + small_bytes,
    )

    out = pl.pallas_call(
        kernel,
        out_shape=jax.ShapeDtypeStruct((B_pad, OUT_DIM), jnp.float32),
        grid_spec=pltpu.PrefetchScalarGridSpec(
            num_scalar_prefetch=0,
            grid=grid,
            in_specs=[
                # Streamed hidden states, tiled over (batch, seq).
                pl.BlockSpec((TB, TS, D), lambda i, k: (i, k, 0)),
                # Small params: constant block index across k -> stay resident.
                pl.BlockSpec((1, D), lambda i, k: (0, 0)),          # bn scale
                pl.BlockSpec((1, D), lambda i, k: (0, 0)),          # bn shift
                pl.BlockSpec((D, OUT_DIM), lambda i, k: (0, 0)),    # fc weight
                pl.BlockSpec((1, OUT_DIM), lambda i, k: (0, 0)),    # fc bias
            ],
            # Output block constant across k: written once in the finalize step.
            out_specs=pl.BlockSpec((TB, OUT_DIM), lambda i, k: (i, 0)),
            scratch_shapes=[pltpu.VMEM((TB, D), jnp.float32)],      # seq-sum acc
        ),
        compiler_params=pltpu.CompilerParams(
            dimension_semantics=("parallel", "arbitrary"),
            vmem_limit_bytes=vmem_limit,
        ),
        cost_estimate=cost,
    )(hidden, scale, shift, w2, b2)

    return out[:B] if B_pad != B else out


def make_params(key):
    """Deterministic synthetic parameters (shapes from the module __init__)."""
    k_emb, k_g, k_b, k_m, k_v, k_w, k_bias = jax.random.split(key, 7)
    vocab = 1000
    params = {
        # Stand-in for the DistilRoBERTa backbone's token embedding table.
        "emb_table": jax.random.normal(k_emb, (vocab, EMBED_DIM), jnp.float32) * 0.02,
        # BatchNorm1d(768)
        "bn_gamma": 1.0 + 0.01 * jax.random.normal(k_g, (EMBED_DIM,), jnp.float32),
        "bn_beta": 0.01 * jax.random.normal(k_b, (EMBED_DIM,), jnp.float32),
        "bn_running_mean": 0.01 * jax.random.normal(k_m, (EMBED_DIM,), jnp.float32),
        "bn_running_var": jnp.abs(
            1.0 + 0.01 * jax.random.normal(k_v, (EMBED_DIM,), jnp.float32)),
        # Linear(768, 4)  (stored as [in, out] for x @ W)
        "fc_w": jax.random.normal(k_w, (EMBED_DIM, OUT_DIM), jnp.float32) * 0.02,
        "fc_b": 0.01 * jax.random.normal(k_bias, (OUT_DIM,), jnp.float32),
    }
    return params


def forward(params, input_ids, attention_mask, max_ts=None):
    # Glue: synthetic "backbone" producing last hidden states [B, S, D].
    # bf16 materialization halves HBM traffic on the dominant tensor; the
    # kernel accumulates in f32.
    hidden = params["emb_table"][input_ids].astype(jnp.bfloat16)
    # The reference forward mean-pools over ALL positions regardless of mask,
    # so attention_mask only feeds the (stand-in) backbone and is unused here.
    del attention_mask
    return evidence_head(
        hidden,
        params["bn_gamma"], params["bn_beta"],
        params["bn_running_mean"], params["bn_running_var"],
        params["fc_w"], params["fc_b"],
        max_ts=max_ts,
    )


def reference(params, input_ids, attention_mask):
    """Pure-JAX reference of the same math (PyTorch semantics), same bf16 hidden."""
    del attention_mask
    hidden = params["emb_table"][input_ids].astype(jnp.bfloat16).astype(jnp.float32)
    pooled = jnp.mean(hidden, axis=1)
    norm = jnp.sqrt(jnp.sum(pooled * pooled, axis=-1, keepdims=True))
    x = pooled / jnp.maximum(norm, NORM_EPS)
    xhat = (x - params["bn_running_mean"]) * jax.lax.rsqrt(
        params["bn_running_var"] + BN_EPS)
    x = xhat * params["bn_gamma"] + params["bn_beta"]
    x = jnp.maximum(x, 0.0)
    return x @ params["fc_w"] + params["fc_b"]


if __name__ == "__main__":
    key = jax.random.PRNGKey(0)
    params = make_params(key)

    # 1) Primary small-shape check (B=2, S=8): single grid step, TB=B fallback.
    B, S = 2, 8
    k_ids = jax.random.fold_in(key, 123)
    input_ids = jax.random.randint(k_ids, (B, S), 0, 1000, dtype=jnp.int32)
    attention_mask = jnp.ones((B, S), dtype=jnp.int32)

    out = jax.block_until_ready(forward(params, input_ids, attention_mask))
    ref = jax.block_until_ready(reference(params, input_ids, attention_mask))
    assert out.shape == (B, OUT_DIM)
    assert jnp.allclose(out, ref, atol=1e-3, rtol=1e-3), (out, ref)

    # 2) Tiled reduction + parallel batch axis:
    #    B=16 -> TB=8 (2 batch tiles), S=32 with max_ts=16 -> 2 reduction steps.
    B2, S2 = 16, 32
    k_ids2 = jax.random.fold_in(key, 456)
    input_ids2 = jax.random.randint(k_ids2, (B2, S2), 0, 1000, dtype=jnp.int32)
    attention_mask2 = jnp.ones((B2, S2), dtype=jnp.int32)

    out2 = jax.block_until_ready(forward(params, input_ids2, attention_mask2,
                                         max_ts=16))
    ref2 = jax.block_until_ready(reference(params, input_ids2, attention_mask2))
    assert out2.shape == (B2, OUT_DIM)
    assert jnp.allclose(out2, ref2, atol=1e-3, rtol=1e-3), (out2, ref2)

    # 3) Ragged batch exercising the zero-pad path: B=10 -> padded to 16,
    #    TB=8 (2 batch tiles), output sliced back to 10 rows.
    B3, S3 = 10, 32
    k_ids3 = jax.random.fold_in(key, 789)
    input_ids3 = jax.random.randint(k_ids3, (B3, S3), 0, 1000, dtype=jnp.int32)
    attention_mask3 = jnp.ones((B3, S3), dtype=jnp.int32)

    out3 = jax.block_until_ready(forward(params, input_ids3, attention_mask3,
                                         max_ts=16))
    ref3 = jax.block_until_ready(reference(params, input_ids3, attention_mask3))
    assert out3.shape == (B3, OUT_DIM)
    assert jnp.allclose(out3, ref3, atol=1e-3, rtol=1e-3), (out3, ref3)

    print("KERNEL_OK")
</pallas_src>

<mosaic_0001>
module attributes {stable_mosaic.version = 11 : i64} {
  func.func @_evidence_head_kernel(%arg0: i32, %arg1: i32, %arg2: memref<2x8x768xbf16, #tpu.memory_space<vmem>>, %arg3: memref<1x768xf32, #tpu.memory_space<vmem>>, %arg4: memref<1x768xf32, #tpu.memory_space<vmem>>, %arg5: memref<768x4xf32, #tpu.memory_space<vmem>>, %arg6: memref<1x4xf32, #tpu.memory_space<vmem>>, %arg7: memref<2x4xf32, #tpu.memory_space<vmem>>, %arg8: memref<2x768xf32, #tpu.memory_space<vmem>>) attributes {dimension_semantics = [#tpu.dimension_semantics<parallel>, #tpu.dimension_semantics<arbitrary>], iteration_bounds = array<i64: 1, 1>, scalar_prefetch = 0 : i64, scratch_operands = 1 : i64, tpu.core_type = #tpu.core_type<tc>, window_params = [{transform_indices = @transform_0, window_bounds = array<i64: 2, 8, 768>}, {pipeline_mode = #tpu.pipeline_mode<synchronous>, transform_indices = @transform_1, window_bounds = array<i64: 1, 768>}, {pipeline_mode = #tpu.pipeline_mode<synchronous>, transform_indices = @transform_2, window_bounds = array<i64: 1, 768>}, {pipeline_mode = #tpu.pipeline_mode<synchronous>, transform_indices = @transform_3, window_bounds = array<i64: 768, 4>}, {pipeline_mode = #tpu.pipeline_mode<synchronous>, transform_indices = @transform_4, window_bounds = array<i64: 1, 4>}, {transform_indices = @transform_5, window_bounds = array<i64: 2, 4>}]} {
    %c0_i32 = arith.constant 0 : i32
    %0 = arith.cmpi eq, %arg1, %c0_i32 : i32
    %1 = arith.extui %0 : i1 to i32
    %c0_i32_0 = arith.constant 0 : i32
    %2 = arith.cmpi ne, %1, %c0_i32_0 : i32
    scf.if %2 {
      %cst_9 = arith.constant 0.000000e+00 : f32
      %12 = vector.broadcast %cst_9 : f32 to vector<2x768xf32>
      %c0_10 = arith.constant 0 : index
      %c0_11 = arith.constant 0 : index
      %13 = vector.load %arg8[%c0_10, %c0_11] : memref<2x768xf32, #tpu.memory_space<vmem>>, vector<2x768xf32>
      tpu.vector_store %arg8[%c0_10, %c0_11], %12 {strides = array<i32>} : memref<2x768xf32, #tpu.memory_space<vmem>>, vector<2x768xf32>,
    } else {
    }
    %c0 = arith.constant 0 : index
    %c0_1 = arith.constant 0 : index
    %3 = vector.load %arg8[%c0, %c0_1] : memref<2x768xf32, #tpu.memory_space<vmem>>, vector<2x768xf32>
    %c0_2 = arith.constant 0 : index
    %c0_3 = arith.constant 0 : index
    %c0_4 = arith.constant 0 : index
    %4 = vector.load %arg2[%c0_2, %c0_3, %c0_4] : memref<2x8x768xbf16, #tpu.memory_space<vmem>>, vector<2x8x768xbf16>
    %5 = arith.extf %4 : vector<2x8x768xbf16> to vector<2x8x768xf32>
    %cst = arith.constant dense<0.000000e+00> : vector<2x768xf32>
    %6 = vector.multi_reduction <add>, %5, %cst [1] : vector<2x8x768xf32> to vector<2x768xf32>
    %7 = arith.addf %3, %6 : vector<2x768xf32>
    %c0_5 = arith.constant 0 : index
    %c0_6 = arith.constant 0 : index
    %8 = vector.load %arg8[%c0_5, %c0_6] : memref<2x768xf32, #tpu.memory_space<vmem>>, vector<2x768xf32>
    tpu.vector_store %arg8[%c0_5, %c0_6], %7 {strides = array<i32>} : memref<2x768xf32, #tpu.memory_space<vmem>>, vector<2x768xf32>,
    %c0_i32_7 = arith.constant 0 : i32
    %9 = arith.cmpi eq, %arg1, %c0_i32_7 : i32
    %10 = arith.extui %9 : i1 to i32
    %c0_i32_8 = arith.constant 0 : i32
    %11 = arith.cmpi ne, %10, %c0_i32_8 : i32
    scf.if %11 {
      %c0_9 = arith.constant 0 : index
      %c0_10 = arith.constant 0 : index
      %12 = vector.load %arg8[%c0_9, %c0_10] : memref<2x768xf32, #tpu.memory_space<vmem>>, vector<2x768xf32>
      %13 = arith.mulf %12, %12 : vector<2x768xf32>
      %cst_11 = arith.constant dense<0.000000e+00> : vector<2xf32>
      %14 = vector.multi_reduction <add>, %13, %cst_11 [1] : vector<2x768xf32> to vector<2xf32>
      %15 = vector.shape_cast %14 : vector<2xf32> to vector<2x1xf32>
      %cst_12 = arith.constant 8.000000e-12 : f32
      %cst_13 = arith.constant 8.000000e-12 : f32
      %16 = arith.mulf %cst_12, %cst_13 : f32
      %17 = vector.broadcast %16 : f32 to vector<2x1xf32>
      %18 = arith.maximumf %15, %17 : vector<2x1xf32>
      %19 = math.rsqrt %18 : vector<2x1xf32>
      %20 = vector.broadcast %19 : vector<2x1xf32> to vector<2x768xf32>
      %21 = arith.mulf %12, %20 : vector<2x768xf32>
      %c0_14 = arith.constant 0 : index
      %c0_15 = arith.constant 0 : index
      %22 = vector.load %arg3[%c0_14, %c0_15] : memref<1x768xf32, #tpu.memory_space<vmem>>, vector<1x768xf32>
      %23 = vector.broadcast %22 : vector<1x768xf32> to vector<2x768xf32>
      %24 = arith.mulf %21, %23 : vector<2x768xf32>
      %c0_16 = arith.constant 0 : index
      %c0_17 = arith.constant 0 : index
      %25 = vector.load %arg4[%c0_16, %c0_17] : memref<1x768xf32, #tpu.memory_space<vmem>>, vector<1x768xf32>
      %26 = vector.broadcast %25 : vector<1x768xf32> to vector<2x768xf32>
      %27 = arith.addf %24, %26 : vector<2x768xf32>
      %cst_18 = arith.constant 0.000000e+00 : f32
      %28 = vector.broadcast %cst_18 : f32 to vector<2x768xf32>
      %29 = arith.maximumf %27, %28 : vector<2x768xf32>
      %c0_19 = arith.constant 0 : index
      %c0_20 = arith.constant 0 : index
      %30 = vector.load %arg5[%c0_19, %c0_20] : memref<768x4xf32, #tpu.memory_space<vmem>>, vector<768x4xf32>
      %cst_21 = arith.constant dense<0.000000e+00> : vector<2x4xf32>
      %31 = tpu.matmul %29, %30, %cst_21 {dimension_numbers = #tpu.dot_dimension_numbers<[1], [0], [0], [1], [0, 0, 1, 1], [], []>} : vector<2x768xf32>, vector<768x4xf32>, vector<2x4xf32> -> vector<2x4xf32>
      %c0_22 = arith.constant 0 : index
      %c0_23 = arith.constant 0 : index
      %32 = vector.load %arg6[%c0_22, %c0_23] : memref<1x4xf32, #tpu.memory_space<vmem>>, vector<1x4xf32>
      %33 = vector.broadcast %32 : vector<1x4xf32> to vector<2x4xf32>
      %34 = arith.addf %31, %33 : vector<2x4xf32>
      %c0_24 = arith.constant 0 : index
      %c0_25 = arith.constant 0 : index
      %35 = vector.load %arg7[%c0_24, %c0_25] : memref<2x4xf32, #tpu.memory_space<vmem>>, vector<2x4xf32>
      tpu.vector_store %arg7[%c0_24, %c0_25], %34 {strides = array<i32>} : memref<2x4xf32, #tpu.memory_space<vmem>>, vector<2x4xf32>,
    } else {
    }
    return
  }
  func.func @transform_0(%arg0: i32, %arg1: i32) -> (i32, i32, i32) {
    %c0_i32 = arith.constant 0 : i32
    %c0_i32_0 = arith.constant 0 : i32
    return %arg0, %arg1, %c0_i32 : i32, i32, i32
  }
  func.func @transform_1(%arg0: i32, %arg1: i32) -> (i32, i32) {
    %c0_i32 = arith.constant 0 : i32
    %c0_i32_0 = arith.constant 0 : i32
    %c0_i32_1 = arith.constant 0 : i32
    return %c0_i32, %c0_i32_0 : i32, i32
  }
  func.func @transform_2(%arg0: i32, %arg1: i32) -> (i32, i32) {
    %c0_i32 = arith.constant 0 : i32
    %c0_i32_0 = arith.constant 0 : i32
    %c0_i32_1 = arith.constant 0 : i32
    return %c0_i32, %c0_i32_0 : i32, i32
  }
  func.func @transform_3(%arg0: i32, %arg1: i32) -> (i32, i32) {
    %c0_i32 = arith.constant 0 : i32
    %c0_i32_0 = arith.constant 0 : i32
    %c0_i32_1 = arith.constant 0 : i32
    return %c0_i32, %c0_i32_0 : i32, i32
  }
  func.func @transform_4(%arg0: i32, %arg1: i32) -> (i32, i32) {
    %c0_i32 = arith.constant 0 : i32
    %c0_i32_0 = arith.constant 0 : i32
    %c0_i32_1 = arith.constant 0 : i32
    return %c0_i32, %c0_i32_0 : i32, i32
  }
  func.func @transform_5(%arg0: i32, %arg1: i32) -> (i32, i32) {
    %c0_i32 = arith.constant 0 : i32
    %c0_i32_0 = arith.constant 0 : i32
    return %arg0, %c0_i32 : i32, i32
  }
}

</mosaic_0001>

<bundles_post_ra>
// kernel: tpu_custom_call.1
= control target key start
LH: loop header
LB: loop body
LE: loop exit
PB: predicated region body
PF: predicated region fallthrough
CT: control target
= control target key end

     0   :  { %v980_v3 = vmov 0.0   ;;  %s1396_s0 = inlined_call_operand.vmem [shape: bf16[2,8,768], index: 0, kind: input, shape index: {}]   ;;  %s1397_s1 = inlined_call_operand.vmem [shape: f32[1,768], index: 1, kind: input, shape index: {}]   ;;  %s1398_s2 = inlined_call_operand.vmem [shape: f32[1,768], index: 2, kind: input, shape index: {}]   ;;  %s1399_s3 = inlined_call_operand.vmem [shape: f32[768,4], index: 3, kind: input, shape index: {}]   ;;  %s1400_s4 = inlined_call_operand.vmem [shape: f32[1,4], index: 4, kind: input, shape index: {}]   ;;  %s1401_s5 = inlined_call_operand.hbm [shape: f32[2,4], index: 5, kind: output, shape index: {}]  }
   0x1   :  { %v29_v0 = vld [vmem:[%s1396_s0] sm:$0xff]  ;;  %v30_v1 = vld [vmem:[%s1396_s0 + $0x8] sm:$0xff]  ;;  %v31_v2 = vld [vmem:[%s1396_s0 + $0x10] sm:$0xff]  ;;  %26 = vst [vmem:[#allocation2 + $0x8] sm:$0xf] %v980_v3 }
   0x2   :  { %v32_v4 = vld [vmem:[%s1396_s0 + $0x18] sm:$0xff]  ;;  %v1029_v5 = vld [vmem:[%s1396_s0 + $0x20] sm:$0xff]  ;;  %v35_v6 = vunpack.c.l.bf16 %v29_v0  ;;  %v36_v7 = vunpack.c.h.bf16 %v29_v0  ;;  %v37_v8 = vunpack.c.l.bf16 %v30_v1  ;;  %v38_v9 = vunpack.c.h.bf16 %v30_v1 }
   0x3   :  { %v39_v10 = vunpack.c.l.bf16 %v31_v2  ;;  %v40_v11 = vunpack.c.h.bf16 %v31_v2  ;;  %v41_v12 = vunpack.c.l.bf16 %v32_v4  ;;  %v42_v13 = vunpack.c.h.bf16 %v32_v4 }
   0x4   :  { %v43_v14 = vunpack.c.l.bf16 %v1029_v5  ;;  %v47_v15 = vrot.slane %v35_v6, 4  ;;  %v53_v16 = vrot.slane %v36_v7, 4  ;;  %v59_v17 = vrot.slane %v37_v8, 4 }
   0x5   :  { %v65_v18 = vrot.slane %v38_v9, 4 }
   0x6   :  { %10 = vsyncpa [#allocation4], 0  ;;  %v71_v19 = vrot.slane %v39_v10, 4  ;;  %v77_v20 = vrot.slane %v40_v11, 4  ;;  %v83_v21 = vrot.slane %v41_v12, 4  ;;  %v89_v22 = vrot.slane %v42_v13, 4 }
   0x7   :  { %v48_v23 = vadd.f32 %v47_v15, %v35_v6  ;;  %v54_v24 = vadd.f32 %v53_v16, %v36_v7  ;;  %v60_v25 = vadd.f32 %v59_v17, %v37_v8  ;;  %v66_v26 = vadd.f32 %v65_v18, %v38_v9  ;;  %v34_v35 = vld [vmem:[%s1396_s0 + $0x28] sm:$0xff] }
   0x8   :  { %v72_v27 = vadd.f32 %v71_v19, %v39_v10  ;;  %v78_v28 = vadd.f32 %v77_v20, %v40_v11  ;;  %v84_v29 = vadd.f32 %v83_v21, %v41_v12  ;;  %v90_v30 = vadd.f32 %v89_v22, %v42_v13  ;;  %v402_v21 = vld [vmem:[%s1399_s3 + $0x80] sm:$0xff] }
   0x9   :  { %v49_v31 = vrot.slane %v48_v23, 2  ;;  %v55_v32 = vrot.slane %v54_v24, 2  ;;  %v61_v33 = vrot.slane %v60_v25, 2  ;;  %v67_v34 = vrot.slane %v66_v26, 2 }
   0xa   :  { %v73_v36 = vrot.slane %v72_v27, 2  ;;  %v79_v37 = vrot.slane %v78_v28, 2  ;;  %v85_v38 = vrot.slane %v84_v29, 2  ;;  %v91_v39 = vrot.slane %v90_v30, 2 }
   0xb   :  { %v50_v40 = vadd.f32 %v49_v31, %v48_v23  ;;  %v56_v41 = vadd.f32 %v55_v32, %v54_v24  ;;  %v62_v42 = vadd.f32 %v61_v33, %v60_v25  ;;  %v68_v43 = vadd.f32 %v67_v34, %v66_v26  ;;  %v403_v25 = vld [vmem:[%s1399_s3 + $0x88] sm:$0xff]  ;;  %v386_v26 = vld [vmem:[%s1399_s3] sm:$0xff] }
   0xc   :  { %v74_v44 = vadd.f32 %v73_v36, %v72_v27  ;;  %v80_v45 = vadd.f32 %v79_v37, %v78_v28  ;;  %v86_v46 = vadd.f32 %v85_v38, %v84_v29  ;;  %v92_v47 = vadd.f32 %v91_v39, %v90_v30  ;;  %v387_v27 = vld [vmem:[%s1399_s3 + $0x8] sm:$0xff]  ;;  %v434_v36 = vld [vmem:[%s1399_s3 + $0x180] sm:$0xff] }
   0xd   :  { %v44_v48 = vunpack.c.h.bf16 %v1029_v5  ;;  %v45_v49 = vunpack.c.l.bf16 %v34_v35  ;;  %v46_v50 = vunpack.c.h.bf16 %v34_v35  ;;  %v51_v51 = vrot.slane %v50_v40, 1  ;;  %v435_v37 = vld [vmem:[%s1399_s3 + $0x188] sm:$0xff] }
   0xe   :  { %v57_v52 = vrot.slane %v56_v41, 1  ;;  %v63_v53 = vrot.slane %v62_v42, 1  ;;  %v69_v54 = vrot.slane %v68_v43, 1  ;;  %v75_v55 = vrot.slane %v74_v44, 1 }
   0xf   :  { %v136_v56 = vlaneseq  ;;  %v52_v57 = vadd.f32 %v51_v51, %v50_v40  ;;  %v81_v58 = vrot.slane %v80_v45, 1  ;;  %v87_v59 = vrot.slane %v86_v46, 1 }
  0x10   :  { %v93_v60 = vrot.slane %v92_v47, 1  ;;  %v95_v61 = vrot.slane %v43_v14, 4  ;;  %v101_v62 = vrot.slane %v44_v48, 4  ;;  %v107_v63 = vrot.slane %v45_v49, 4 }
  0x11   :  { %v113_v0 = vrot.slane %v46_v50, 4  ;;  %v58_v1 = vadd.f32 %v57_v52, %v56_v41  ;;  %v64_v2 = vadd.f32 %v63_v53, %v62_v42  ;;  %v70_v3 = vadd.f32 %v69_v54, %v68_v43 }
  0x12   :  { %v981_v4 = vmov 1983009808   ;;  %v96_v6 = vadd.f32 %v95_v61, %v43_v14  ;;  %v102_v7 = vadd.f32 %v101_v62, %v44_v48  ;;  %v108_v8 = vadd.f32 %v107_v63, %v45_v49 }
  0x13   :  { %v134_v5 = vunpack.c.l.s4 %v981_v4  ;;  %v114_v9 = vadd.f32 %v113_v0, %v46_v50  ;;  %v88_v10 = vadd.f32 %v87_v59, %v86_v46  ;;  %v94_v11 = vadd.f32 %v93_v60, %v92_v47  ;;  %v28_v59 = vld [vmem:[#allocation2 + $0x8] sm:$0xf] }
  0x14   :  { %v1036_v13 = vshrl.u32 %v136_v56, 7  ;;  %v97_v15 = vrot.slane %v96_v6, 2  ;;  %v103_v16 = vrot.slane %v102_v7, 2  ;;  %v109_v17 = vrot.slane %v108_v8, 2 }
  0x15   :  { %v135_v12 = vunpack.c.0.s8 %v134_v5  ;;  %v115_v18 = vrot.slane %v114_v9, 2  ;;  %v76_v19 = vadd.f32 %v75_v55, %v74_v44  ;;  %v82_v20 = vadd.f32 %v81_v58, %v80_v45 }
  0x16   :  { %v98_v22 = vadd.f32 %v97_v15, %v96_v6  ;;  %v104_v14 = vadd.f32 %v103_v16, %v102_v7  ;;  %v110_v23 = vadd.f32 %v109_v17, %v108_v8  ;;  %v131_v28 = vcombine.low %v52_v57, %v58_v1 }
  0x17   :  { %v116_v24 = vadd.f32 %v115_v18, %v114_v9  ;;  %v132_v29 = vcombine.low %v64_v2, %v70_v3  ;;  %v1051_v30 = vsub.s32 %v135_v12, %v1036_v13  ;;  %v156_v31 = vcombine.low %v88_v10, %v94_v11 }
  0x18   :  { %v99_v32 = vrot.slane %v98_v22, 1  ;;  %v105_v33 = vrot.slane %v104_v14, 1  ;;  %v111_v34 = vrot.slane %v110_v23, 1  ;;  %v148_v38 = vcombine.low %v76_v19, %v82_v20 }
  0x19   :  { %v117_v35 = vrot.slane %v116_v24, 1  ;;  %v854_v39 = vpack.c.bf16 %v403_v25, %v402_v21  ;;  %v856_v40 = vpack.c.bf16 %v387_v27, %v386_v26  ;;  %v139_v45 = vrot.slane %v131_v28, %v1051_v30  ;;  %v404_v26 = vld [vmem:[%s1399_s3 + $0x90] sm:$0xff]  ;;  %v405_v27 = vld [vmem:[%s1399_s3 + $0x98] sm:$0xff]  ;;  %v418_v28 = vld [vmem:[%s1399_s3 + $0x100] sm:$0xff] }
  0x1a   :  { %v100_v41 = vadd.f32 %v99_v32, %v98_v22  ;;  %v106_v42 = vadd.f32 %v105_v33, %v104_v14  ;;  %v112_v43 = vadd.f32 %v111_v34, %v110_v23  ;;  %v886_v46 = vpack.c.bf16 %v435_v37, %v434_v36  ;;  %v388_v32 = vld [vmem:[%s1399_s3 + $0x10] sm:$0xff]  ;;  %v389_v33 = vld [vmem:[%s1399_s3 + $0x18] sm:$0xff] }
  0x1b   :  { %v118_v44 = vadd.f32 %v117_v35, %v116_v24  ;;  %855 = vmatprep.subr.bf16.mxu0 %v854_v39  ;;  %v146_v47 = vrot.slane %v132_v29, %v1051_v30  ;;  %v164_v49 = vrot.slane %v156_v31, %v1051_v30  ;;  %v155_v51 = vrot.slane %v148_v38, %v1051_v30  ;;  %v419_v31 = vld [vmem:[%s1399_s3 + $0x108] sm:$0xff]  ;;  %v436_v36 = vld [vmem:[%s1399_s3 + $0x190] sm:$0xff]  ;;  %v437_v37 = vld [vmem:[%s1399_s3 + $0x198] sm:$0xff] }
  0x1c   :  { %v157_v48 = vcombine.low %v100_v41, %v106_v42  ;;  %857 = vmatpush3.bf16.msra.mxu0 %v856_v40  ;;  %887 = vmatprep.subr.bf16.mxu1 %v886_v46  ;;  %vm186_vm0 = vcmask 1041409   ;;  %vm188_vm1 = vcmask 1043459   ;;  %vm190_vm2 = vcmask 1045509   ;;  %v406_v39 = vld [vmem:[%s1399_s3 + $0xa0] sm:$0xff]  ;;  %v407_v40 = vld [vmem:[%s1399_s3 + $0xa8] sm:$0xff]  ;;  %v420_v41 = vld [vmem:[%s1399_s3 + $0x110] sm:$0xff] }
  0x1d   :  { %v173_v50 = vcombine.low %v112_v43, %v118_v44  ;;  %v147_v54 = vcombine.low %v139_v45, %v146_v47  ;;  %vm192_vm3 = vcmask 1047559   ;;  %vm247_vm4 = vcmask 1041408   ;;  %v421_v43 = vld [vmem:[%s1399_s3 + $0x118] sm:$0xff]  ;;  %v390_v44 = vld [vmem:[%s1399_s3 + $0x20] sm:$0xff]  ;;  %v391_v45 = vld [vmem:[%s1399_s3 + $0x28] sm:$0xff] }
  0x1e   :  { %v171_v52 = vrot.slane %v157_v48, %v1051_v30  ;;  %v858_v29 = vpack.c.bf16 %v405_v27, %v404_v26  ;;  %v888_v34 = vpack.c.bf16 %v419_v31, %v418_v28  ;;  %v860_v35 = vpack.c.bf16 %v389_v33, %v388_v32  ;;  %v438_v48 = vld [vmem:[%s1399_s3 + $0x1a0] sm:$0xff]  ;;  %v428_v27 = vld [vmem:[%s1399_s3 + $0x150] sm:$0xff]  ;;  %v429_v28 = vld [vmem:[%s1399_s3 + $0x158] sm:$0xff] }
  0x1f   :  { %v180_v53 = vrot.slane %v173_v50, %v1051_v30  ;;  %v890_v38 = vpack.c.bf16 %v437_v37, %v436_v36  ;;  %v862_v42 = vpack.c.bf16 %v407_v40, %v406_v39  ;;  %v892_v46 = vpack.c.bf16 %v421_v43, %v420_v41  ;;  %v408_v50 = vld [vmem:[%s1399_s3 + $0xb0] sm:$0xff]  ;;  %v398_v32 = vld [vmem:[%s1399_s3 + $0x60] sm:$0xff]  ;;  %v399_v33 = vld [vmem:[%s1399_s3 + $0x68] sm:$0xff] }
  0x20   :  { %v172_v55 = vcombine.low %v164_v49, %v171_v52  ;;  %859 = vmatprep.subr.bf16.mxu0 %v858_v29  ;;  %889 = vmatpush3.bf16.msra.mxu1 %v888_v34  ;;  %v864_v47 = vpack.c.bf16 %v391_v45, %v390_v44  ;;  %v439_v49 = vld [vmem:[%s1399_s3 + $0x1a8] sm:$0xff]  ;;  %v409_v52 = vld [vmem:[%s1399_s3 + $0xb8] sm:$0xff]  ;;  %v446_v34 = vld [vmem:[%s1399_s3 + $0x1e0] sm:$0xff]  ;;  %v880_v39 = vpack.c.bf16 %v399_v33, %v398_v32  ;;  %vm732_vm5 = vcmask 25600  }
  0x21   :  { %v196_v56 = vrot.slane %v180_v53, 7  ;;  %861 = vmatpush3.bf16.msra.mxu0 %v860_v35  ;;  %891 = vmatprep.subr.bf16.mxu1 %v890_v38  ;;  %v422_v53 = vld [vmem:[%s1399_s3 + $0x120] sm:$0xff]  ;;  %v447_v35 = vld [vmem:[%s1399_s3 + $0x1e8] sm:$0xff]  ;;  %v416_v36 = vld [vmem:[%s1399_s3 + $0xf0] sm:$0xff]  ;;  %v908_v38 = vpack.c.bf16 %v429_v28, %v428_v27 }
  0x22   :  { %v185_v57 = vrot.slane %v172_v55, 7  ;;  %863 = vmatprep.subr.bf16.mxu0 %v862_v42  ;;  %v866_v55 = vpack.c.bf16 %v409_v52, %v408_v50  ;;  %v417_v37 = vld [vmem:[%s1399_s3 + $0xf8] sm:$0xff]  ;;  %v430_v40 = vld [vmem:[%s1399_s3 + $0x160] sm:$0xff]  ;;  %v910_v41 = vpack.c.bf16 %v447_v35, %v446_v34  ;;  %v431_v43 = vld [vmem:[%s1399_s3 + $0x168] sm:$0xff] }
  0x23   :  { %v197_v58 = vsel %vm186_vm0, %v196_v56, %v155_v51  ;;  %v894_v51 = vpack.c.bf16 %v439_v49, %v438_v48  ;;  %v882_v42 = vpack.c.bf16 %v417_v37, %v416_v36  ;;  %v400_v44 = vld [vmem:[%s1399_s3 + $0x70] sm:$0xff]  ;;  %v401_v45 = vld [vmem:[%s1399_s3 + $0x78] sm:$0xff]  ;;  %v912_v48 = vpack.c.bf16 %v431_v43, %v430_v40 }
  0x24   :  { %v198_v60 = vsel %vm188_vm1, %v196_v56, %v197_v58  ;;  %v187_v61 = vsel %vm186_vm0, %v185_v57, %v147_v54  ;;  %v423_v54 = vld [vmem:[%s1399_s3 + $0x128] sm:$0xff]  ;;  %893 = vmatpush3.bf16.msra.mxu1 %v892_v46  ;;  %v393_v58 = vld [vmem:[%s1399_s3 + $0x38] sm:$0xff]  ;;  %v448_v46 = vld [vmem:[%s1399_s3 + $0x1f0] sm:$0xff]  ;;  %v884_v49 = vpack.c.bf16 %v401_v45, %v400_v44 }
  0x25   :  { %v199_v62 = vsel %vm190_vm2, %v196_v56, %v198_v60  ;;  %v189_v63 = vsel %vm188_vm1, %v185_v57, %v187_v61  ;;  %865 = vmatpush3.bf16.msra.mxu0 %v864_v47  ;;  %895 = vmatprep.subr.bf16.mxu1 %v894_v51  ;;  %v441_v61 = vld [vmem:[%s1399_s3 + $0x1b8] sm:$0xff]  ;;  %v432_v51 = vld [vmem:[%s1399_s3 + $0x170] sm:$0xff] }
  0x26   :  { %v200_v0 = vsel %vm192_vm3, %v196_v56, %v199_v62  ;;  %v191_v1 = vsel %vm190_vm2, %v185_v57, %v189_v63  ;;  %v896_v56 = vpack.c.bf16 %v423_v54, %v422_v53  ;;  %v410_v62 = vld [vmem:[%s1399_s3 + $0xc0] sm:$0xff]  ;;  %v411_v63 = vld [vmem:[%s1399_s3 + $0xc8] sm:$0xff]  ;;  %867 = vmatprep.subr.bf16.mxu0 %v866_v55  ;;  %v449_v47 = vld [vmem:[%s1399_s3 + $0x1f8] sm:$0xff] }
  0x27   :  { %v204_v2 = vadd.f32 %v200_v0, %v28_v59  ;;  %v1065_v3 = vsel %vm192_vm3, %v185_v57, %v191_v1  ;;  %v392_v57 = vld [vmem:[%s1399_s3 + $0x30] sm:$0xff]  ;;  %v870_v1 = vpack.c.bf16 %v411_v63, %v410_v62  ;;  %v914_v50 = vpack.c.bf16 %v449_v47, %v448_v46  ;;  %v433_v52 = vld [vmem:[%s1399_s3 + $0x178] sm:$0xff]  ;;  %v466_v53 = vld [vmem:[%s1399_s3 + $0x280] sm:$0xff] }
  0x28   :  { %v212_v4 = vmul.f32 %v1065_v3, %v1065_v3  ;;  %v440_v59 = vld [vmem:[%s1399_s3 + $0x1b0] sm:$0xff]  ;;  %v868_v60 = vpack.c.bf16 %v393_v58, %v392_v57  ;;  %897 = vmatpush3.bf16.msra.mxu1 %v896_v56  ;;  %v916_v54 = vpack.c.bf16 %v433_v52, %v432_v51  ;;  %v467_v55 = vld [vmem:[%s1399_s3 + $0x288] sm:$0xff]  ;;  %v278_v57 = vsub.s32 0, %v1036_v13  ;;  %v450_v46 = vld [vmem:[%s1399_s3 + $0x200] sm:$0xff] }
  0x29   :  { %206 = vst [vmem:[#allocation2 + $0x8] sm:$0xf] %v204_v2  ;;  %v898_v0 = vpack.c.bf16 %v441_v61, %v440_v59  ;;  %v424_v2 = vld [vmem:[%s1399_s3 + $0x130] sm:$0xff]  ;;  %v918_v56 = vpack.c.bf16 %v467_v55, %v466_v53  ;;  %v282_v58 = vsub.s32 1, %v1036_v13  ;;  %v286_v59 = vsub.s32 2, %v1036_v13  ;;  %v451_v47 = vld [vmem:[%s1399_s3 + $0x208] sm:$0xff] }
  0x2a   :  { %v216_v5 = vcombine.high %v212_v4, %v212_v4  ;;  %v223_v6 = vrot.slane %v212_v4, %v1051_v30  ;;  %v425_v4 = vld [vmem:[%s1399_s3 + $0x138] sm:$0xff]  ;;  %869 = vmatpush3.bf16.msra.mxu0 %v868_v60  ;;  %v290_v60 = vsub.s32 3, %v1036_v13  ;;  %v274_v61 = vld [vmem:[%s1397_s1] sm:$0x3f]  ;;  %v920_v52 = vpack.c.bf16 %v451_v47, %v450_v46 }
  0x2b   :  { %899 = vmatprep.subr.bf16.mxu1 %v898_v0  ;;  %871 = vmatprep.subr.bf16.mxu0 %v870_v1  ;;  %v982_v0 = vmov 269488144   ;;  %v453_v55 = vld [vmem:[%s1399_s3 + $0x218] sm:$0xff] }
  0x2c   :  { %v230_v7 = vrot.slane %v216_v5, %v1051_v30  ;;  %v231_v8 = vcombine.high %v223_v6, %v223_v6  ;;  %v248_v9 = vsel %vm247_vm4, %v223_v6, 0.0  ;;  %v394_v5 = vld [vmem:[%s1399_s3 + $0x40] sm:$0xff]  ;;  %v395_v6 = vld [vmem:[%s1399_s3 + $0x48] sm:$0xff]  ;;  %v265_v1 = vunpack.c.l.s4 %v982_v0  ;;  %v472_v0 = vld [vmem:[%s1399_s3 + $0x2b0] sm:$0xff] }
  0x2e   :  { %v232_v12 = vcombine.high %v230_v7, %v230_v7  ;;  %v249_v15 = vsel %vm247_vm4, %v231_v8, 0.0  ;;  %v251_v16 = vsel %vm247_vm4, %v230_v7, 0.0  ;;  %v442_v7 = vld [vmem:[%s1399_s3 + $0x1c0] sm:$0xff]  ;;  %v443_v8 = vld [vmem:[%s1399_s3 + $0x1c8] sm:$0xff] }
  0x2f   :  { %v250_v17 = vadd.f32 %v249_v15, %v248_v9  ;;  %v900_v9 = vpack.c.bf16 %v425_v4, %v424_v2  ;;  %v413_v15 = vld [vmem:[%s1399_s3 + $0xd8] sm:$0xff]  ;;  %v329_v2 = vld [vmem:[%s1398_s2] sm:$0x3f]  ;;  %v294_v4 = vsub.s32 4, %v1036_v13 }
  0x30   :  { %v1072_v10 = vld [vmem:[#allocation2 + $0x8] sm:$0xf]  ;;  %v253_v19 = vsel %vm247_vm4, %v232_v12, 0.0  ;;  %v412_v12 = vld [vmem:[%s1399_s3 + $0xd0] sm:$0xff] }
  0x31   :  { %v213_v11 = vmul.f32 %v1072_v10, %v1072_v10  ;;  %v252_v20 = vadd.f32 %v251_v16, %v250_v17  ;;  %v426_v16 = vld [vmem:[%s1399_s3 + $0x140] sm:$0xff]  ;;  %v902_v17 = vpack.c.bf16 %v443_v8, %v442_v7  ;;  %901 = vmatpush3.bf16.msra.mxu1 %v900_v9  ;;  %v283_v7 = vrot.slane %v274_v61, %v282_v58 }
  0x32   :  { %v287_v8 = vrot.slane %v274_v61, %v286_v59  ;;  %v291_v9 = vrot.slane %v274_v61, %v290_v60 }
  0x33   :  { %v239_v18 = vrot.slane %v213_v11, %v1051_v30  ;;  %v254_v14 = vadd.f32 %v253_v19, %v252_v20  ;;  %v872_v11 = vpack.c.bf16 %v395_v6, %v394_v5  ;;  %v427_v19 = vld [vmem:[%s1399_s3 + $0x148] sm:$0xff]  ;;  %v396_v20 = vld [vmem:[%s1399_s3 + $0x50] sm:$0xff]  ;;  %903 = vmatprep.subr.bf16.mxu1 %v902_v17  ;;  %v298_v5 = vsub.s32 5, %v1036_v13 }
  0x34   :  { %v279_v6 = vrot.slane %v274_v61, %v278_v57  ;;  %v266_v17 = vunpack.c.0.s8 %v265_v1  ;;  %v473_v1 = vld [vmem:[%s1399_s3 + $0x2b8] sm:$0xff] }
  0x35   :  { %v240_v21 = vcombine.high %v239_v18, %v239_v18  ;;  %v255_v22 = vsel %vm247_vm4, %v239_v18, 0.0  ;;  %v874_v18 = vpack.c.bf16 %v413_v15, %v412_v12  ;;  %873 = vmatpush3.bf16.msra.mxu0 %v872_v11  ;;  %v334_v11 = vrot.slane %v329_v2, %v278_v57 }
  0x36   :  { %v256_v24 = vadd.f32 %v255_v22, %v254_v14  ;;  %v444_v22 = vld [vmem:[%s1399_s3 + $0x1d0] sm:$0xff]  ;;  %v445_v14 = vld [vmem:[%s1399_s3 + $0x1d8] sm:$0xff]  ;;  %v338_v12 = vrot.slane %v329_v2, %v282_v58  ;;  %v342_v15 = vrot.slane %v329_v2, %v286_v59  ;;  %v470_v58 = vld [vmem:[%s1399_s3 + $0x2a0] sm:$0xff] }
  0x37   :  { %v257_v23 = vsel %vm247_vm4, %v240_v21, 0.0  ;;  %v397_v21 = vld [vmem:[%s1399_s3 + $0x58] sm:$0xff]  ;;  %875 = vmatprep.subr.bf16.mxu0 %v874_v18  ;;  %v906_v29 = vpack.c.bf16 %v445_v14, %v444_v22  ;;  %v300_v18 = vcombine.low %v279_v6, %v283_v7  ;;  %v471_v59 = vld [vmem:[%s1399_s3 + $0x2a8] sm:$0xff]  ;;  %v474_v7 = vld [vmem:[%s1399_s3 + $0x2c0] sm:$0xff] }
  0x38   :  { %v258_v25 = vadd.f32 %v257_v23, %v256_v24  ;;  %v414_v23 = vld [vmem:[%s1399_s3 + $0xe0] sm:$0xff]  ;;  %v415_v24 = vld [vmem:[%s1399_s3 + $0xe8] sm:$0xff]  ;;  %v876_v26 = vpack.c.bf16 %v397_v21, %v396_v20  ;;  %v295_v20 = vrot.slane %v274_v61, %v294_v4  ;;  %v299_v21 = vrot.slane %v274_v61, %v298_v5  ;;  %v457_v6 = vld [vmem:[%s1399_s3 + $0x238] sm:$0xff] }
  0x39   :  { %v878_v31 = vpack.c.bf16 %v415_v24, %v414_v23  ;;  %v355_v22 = vcombine.low %v334_v11, %v338_v12  ;;  %v350_v23 = vrot.slane %v329_v2, %v294_v4  ;;  %v354_v24 = vrot.slane %v329_v2, %v298_v5  ;;  %v456_v5 = vld [vmem:[%s1399_s3 + $0x230] sm:$0xff]  ;;  %v458_v12 = vld [vmem:[%s1399_s3 + $0x240] sm:$0xff] }
  0x3a   :  { %259 = vadd.xlane.f32.xlu0 %v258_v25  ;;  %v904_v25 = vpack.c.bf16 %v427_v19, %v426_v16  ;;  %877 = vmatpush3.bf16.msra.mxu0 %v876_v26  ;;  %v346_v16 = vrot.slane %v329_v2, %v290_v60  ;;  %v301_v19 = vcombine.low %v287_v8, %v291_v9  ;;  %v475_v8 = vld [vmem:[%s1399_s3 + $0x2c8] sm:$0xff] }
  0x3b   :  { %879 = vmatprep.subr.bf16.mxu0 %v878_v31  ;;  %v308_v26 = vrot.slane %v300_v18, %v1051_v30  ;;  %v317_v28 = vcombine.low %v295_v20, %v299_v21  ;;  %v372_v32 = vcombine.low %v350_v23, %v354_v24  ;;  %v926_v61 = vpack.c.bf16 %v471_v59, %v470_v58  ;;  %v460_v20 = vld [vmem:[%s1399_s3 + $0x250] sm:$0xff]  ;;  %v461_v21 = vld [vmem:[%s1399_s3 + $0x258] sm:$0xff] }
  0x3c   :  { %905 = vmatpush3.bf16.msra.mxu1 %v904_v25  ;;  %v356_v14 = vcombine.low %v342_v15, %v346_v16  ;;  %v269_v25 = vsub.s32 %v266_v17, %v1036_v13  ;;  %v315_v27 = vrot.slane %v301_v19, %v1051_v30  ;;  %v930_v4 = vpack.c.bf16 %v473_v1, %v472_v0  ;;  %v459_v15 = vld [vmem:[%s1399_s3 + $0x248] sm:$0xff]  ;;  %v476_v16 = vld [vmem:[%s1399_s3 + $0x2d0] sm:$0xff]  ;;  %v477_v17 = vld [vmem:[%s1399_s3 + $0x2d8] sm:$0xff] }
  0x3d   :  { %907 = vmatprep.subr.bf16.mxu1 %v906_v29  ;;  %v363_v29 = vrot.slane %v355_v22, %v1051_v30  ;;  %v324_v36 = vrot.slane %v317_v28, %v1051_v30  ;;  %v932_v9 = vpack.c.bf16 %v457_v6, %v456_v5  ;;  %v934_v11 = vpack.c.bf16 %v475_v8, %v474_v7  ;;  %v478_v22 = vld [vmem:[%s1399_s3 + $0x2e0] sm:$0xff]  ;;  %v481_v28 = vld [vmem:[%s1399_s3 + $0x2f8] sm:$0xff] }
  0x3e   :  { %881 = vmatpush3.bf16.msra.mxu0 %v880_v39  ;;  %v370_v31 = vrot.slane %v356_v14, %v1051_v30  ;;  %v316_v35 = vcombine.low %v308_v26, %v315_v27  ;;  %v379_v39 = vrot.slane %v372_v32, %v1051_v30  ;;  %v936_v18 = vpack.c.bf16 %v459_v15, %v458_v12  ;;  %v479_v14 = vld [vmem:[%s1399_s3 + $0x2e8] sm:$0xff]  ;;  %v480_v27 = vld [vmem:[%s1399_s3 + $0x2f0] sm:$0xff] }
  0x3f   :  { %883 = vmatprep.subr.bf16.mxu0 %v882_v42  ;;  %v938_v19 = vpack.c.bf16 %v477_v17, %v476_v16  ;;  %v940_v23 = vpack.c.bf16 %v461_v21, %v460_v20  ;;  %v942_v24 = vpack.c.bf16 %v479_v14, %v478_v22  ;;  %v463_v26 = vld [vmem:[%s1399_s3 + $0x268] sm:$0xff]  ;;  %v464_v32 = vld [vmem:[%s1399_s3 + $0x270] sm:$0xff] }
  0x40   :  { %909 = vmatpush3.bf16.msra.mxu1 %v908_v38  ;;  %v371_v38 = vcombine.low %v363_v29, %v370_v31  ;;  %v946_v31 = vpack.c.bf16 %v481_v28, %v480_v27 }
  0x41   :  { %911 = vmatprep.subr.bf16.mxu1 %v910_v41 }
  0x42   :  { %885 = vmatpush3.bf16.msra.mxu0 %v884_v49  ;;  %v468_v49 = vld [vmem:[%s1399_s3 + $0x290] sm:$0xff] }
  0x43   :  { %919 = vmatprep.subr.bf16.mxu0 %v918_v56 }
  0x44   :  { %913 = vmatpush3.bf16.msra.mxu1 %v912_v48 }
  0x45   :  { %915 = vmatprep.subr.bf16.mxu1 %v914_v50  ;;  %v469_v50 = vld [vmem:[%s1399_s3 + $0x298] sm:$0xff] }
  0x46   :  { %v922_v57 = vpack.c.bf16 %v469_v50, %v468_v49 }
  0x48   :  { %917 = vmatpush3.bf16.msra.mxu1 %v916_v54  ;;  %v452_v54 = vld [vmem:[%s1399_s3 + $0x210] sm:$0xff] }
  0x49   :  { %v924_v60 = vpack.c.bf16 %v453_v55, %v452_v54 }
  0xc7   :  { %v260_v62 = vpop.xlane.xlu0 %259 }
  0xc8   :  { %v261_v63 = vmax.f32 %v260_v62, 6.4e-23  ;;  %v454_v62 = vld [vmem:[%s1399_s3 + $0x220] sm:$0xff] }
  0xca   :  { %954 = vrsqrt.f32 %v261_v63  ;;  %v455_v63 = vld [vmem:[%s1399_s3 + $0x228] sm:$0xff] }
  0xcb   :  { %v928_v2 = vpack.c.bf16 %v455_v63, %v454_v62 }
  0xd4   :  { %v955_v33 = vpop.eup %954 }
  0xd5   :  { %v270_v34 = vrot.slane %v955_v33, %v269_v25  ;;  %v462_v25 = vld [vmem:[%s1399_s3 + $0x260] sm:$0xff]  ;;  %v465_v33 = vld [vmem:[%s1399_s3 + $0x278] sm:$0xff]  ;;  %s983_s3 = smov [#allocation3]  }
  0xd6   :  { %v944_v29 = vpack.c.bf16 %v463_v26, %v462_v25  ;;  %s740_s14 = sshll.u32 %s983_s3, 4  ;;  %s741_s14 = int_to_ptr.vmem [resolvable:$true] %s740_s14 }
  0xd7   :  { %v272_v37 = vmul.f32 %v270_v34, %v1065_v3  ;;  %v273_v13 = vmul.f32 %v270_v34, %v1072_v10  ;;  %v948_v34 = vpack.c.bf16 %v465_v33, %v464_v32  ;;  %s956_s15 = scalar_lea.vmem %s741_s14, 32  ;;  %p961_p1 = scmp.lt.s32.totalorder %s741_s14, %s741_s14 }
  0xd8   :  { %p957_p0 = scmp.ne.s32.totalorder %s741_s14, %s956_s15  ;;  %p962_p2 = scmp.lt.s32.totalorder %s956_s15, %s956_s15 }
  0xd9   :  { %v327_v40 = vmul.f32 %v316_v35, %v272_v37  ;;  %v328_v41 = vmul.f32 %v324_v36, %v273_v13  ;;  %v748_v36 = vld [vmem:[%s1400_s4] ss:$0 sm:$0xff] }
  0xda   :  { %p963_p3 = por %p962_p2, %p961_p1 }
  0xdb   :  { %v382_v42 = vadd.f32 %v371_v38, %v327_v40  ;;  %v383_v43 = vadd.f32 %v379_v39, %v328_v41 }
  0xdc   :  { %p964_p4 = pnand %p963_p3, %p957_p0 }
  0xdd   :  { %v384_v44 = vmax.f32 %v382_v42, 0.0  ;;  %v385_v45 = vmax.f32 %v383_v43, 0.0 }
  0xdf   :  { %v498_v3 = vrot.slane %v384_v44, %v1051_v30  ;;  %v491_v48 = vcombine.high %v384_v44, %v384_v44  ;;  %v1291_v10 = vrot.slane %v385_v45, %v1051_v30 }
  0xe1   :  { %v506_v51 = vcombine.high %v498_v3, %v498_v3  ;;  %v505_v53 = vrot.slane %v491_v48, %v1051_v30  ;;  %v515_v30 = vcombine.high %v1291_v10, %v1291_v10 }
  0xe3   :  { %586 = vmatprep.mubr.f32.mxu0 %v506_v51  ;;  %v507_v56 = vcombine.high %v505_v53, %v505_v53 }
  0xe4   :  { %587 = vmatmul.mubr.f32.vlgmr.msra.gmra.mrb[0].mxu0 %v498_v3 }
  0xe5   :  { %921 = vmatpush3.bf16.msra.mxu0 %v920_v52  ;;  %656 = vmatprep.mubr.f32.mxu1 %v507_v56 }
  0xe6   :  { %726 = vmatprep.mubr.f32.mxu0 %v515_v30  ;;  %657 = vmatmul.mubr.f32.vlgmr.msra.gmra.mrb[0].mxu1 %v505_v53 }
  0xe7   :  { %923 = vmatprep.subr.bf16.mxu0 %v922_v57 }
  0xe9   :  { %925 = vmatpush3.bf16.msra.mxu0 %v924_v60 }
  0xea   :  { %927 = vmatprep.subr.bf16.mxu0 %v926_v61 }
  0xed   :  { %929 = vmatpush3.bf16.msra.mxu0 %v928_v2 }
  0xee   :  { %931 = vmatprep.subr.bf16.mxu0 %v930_v4 }
  0xf1   :  { %933 = vmatpush3.bf16.msra.mxu0 %v932_v9 }
  0xf2   :  { %935 = vmatprep.subr.bf16.mxu0 %v934_v11 }
  0xf5   :  { %937 = vmatpush3.bf16.msra.mxu0 %v936_v18 }
  0xf6   :  { %939 = vmatprep.subr.bf16.mxu0 %v938_v19 }
  0xf9   :  { %941 = vmatpush3.bf16.msra.mxu0 %v940_v23 }
  0xfa   :  { %943 = vmatprep.subr.bf16.mxu0 %v942_v24 }
  0xfd   :  { %945 = vmatpush3.bf16.msra.mxu0 %v944_v29 }
  0xfe   :  { %947 = vmatprep.subr.bf16.mxu0 %v946_v31 }
 0x101   :  { %949 = vmatpush3.bf16.msra.mxu0 %v948_v34 }
 0x104   :  { %727 = vmatmul.mubr.f32.vlgmr.msra.gmra.mrb[2].mxu0 %v1291_v10 }
 0x1b7   :  { %v781_v35 = vpop.f32.mrb[0].mxu0 }
 0x1b8   :  { %v782_v37 = vpop.f32.mrb[1].mxu0 }
 0x1b9   :  { %v783_v38 = vadd.f32 %v782_v37, %v781_v35  ;;  %v816_v13 = vpop.f32.mrb[0].mxu1 }
 0x1ba   :  { %v817_v39 = vpop.f32.mrb[1].mxu1 }
 0x1bb   :  { %v589_v40 = vadd.f32 %v783_v38, %v748_v36  ;;  %v818_v41 = vadd.f32 %v817_v39, %v816_v13 }
 0x1bd   :  { %v659_v42 = vadd.f32 %v818_v41, %v589_v40 }
 0x1d7   :  { %v851_v43 = vpop.f32.mrb[2].mxu0 }
 0x1d8   :  { %v852_v44 = vpop.f32.mrb[3].mxu0 }
 0x1d9   :  { %v853_v45 = vadd.f32 %v852_v44, %v851_v43 }
 0x1db   :  { %v729_v46 = vadd.f32 %v853_v45, %v659_v42 }
 0x1dd   :  { %733 = vst.msk [vmem:[#allocation3] sm:$0x3] %vm732_vm5, %v729_v46 }
 0x1de   :  { %967 = shalt.err (!%p964_p4)
}
 0x1df   :  { %s968_s17 = scalar_lea.hbm %s1401_s5, 32 }
 0x1e0   :  { %p969_p5 = scmp.ne.s32.totalorder %s1401_s5, %s968_s17  ;;  %p972_p6 = scmp.lt.u32.totalorder %s968_s17, %s1401_s5 }
 0x1e2   :  { %p974_p7 = pnand %p972_p6, %p969_p5 }
 0x1e4   :  { %977 = shalt.err (!%p974_p7)
}
 0x1e5   :  { %743 = dma.vmem_to_hbm [thread:$0]  %s741_s14, 32, %s1401_s5, [#allocation4]  }
 0x1e6   :  { %978 = dma.done.wait [#allocation4], 32  }
 0x1e7   :  { %979 = vsyncadd [#allocation4], 4294967264 }
 0x1e8   :  { %747 = vsyncpa [#allocation4], 1 }

</bundles_post_ra>
